<compile_context>
chip_gen: v6e
topology: v6e:2x2x1
jax: 0.10.0
libtpu: 0.0.40
codegen_flags: <defaults>
</compile_context>

<pallas_src>
import functools

import numpy as np
import jax
import jax.numpy as jnp
from jax.experimental import pallas as pl
from jax.experimental.pallas import tpu as pltpu


def _noise_injection_kernel(w_ref, img_ref, noise_ref, o_ref, *,
                            lane_repeat, compute_dtype):
    """One grid step.

    w_ref:     (1,)                      weight in SMEM (scalar path)
    img_ref:   (bb, cb, hw_blk)          image tile in VMEM
    noise_ref: (bb, 1,  hw_blk//repeat)  per-batch noise row in VMEM
    o_ref:     (bb, cb, hw_blk)          output tile in VMEM
    """
    w = w_ref[0].astype(compute_dtype)
    noise = noise_ref[...].astype(compute_dtype)
    if lane_repeat > 1:
        # Small-spatial path: lanes hold `lane_repeat` folded channels, so the
        # noise row repeats along the lane axis (off the VPU critical path).
        noise = jnp.tile(noise, (1, 1, lane_repeat))
    out = img_ref[...].astype(compute_dtype) + w * noise
    o_ref[...] = out.astype(o_ref.dtype)


def _sublane_multiple(dtype):
    # 8 for f32, 16 for bf16, 32 for int8/fp8 (sub-32-bit packs along sublanes).
    return max(8, 32 // jnp.dtype(dtype).itemsize)


def _round_down(x, m):
    return (x // m) * m


def _vmem_capacity_bytes():
    try:
        info = pltpu.get_tpu_info()
        cap = int(getattr(info, "vmem_capacity_bytes", 0) or 0)
        if cap > 0:
            return cap
    except Exception:
        pass
    return 64 << 20  # conservative default (v7x per-TensorCore VMEM)


def _choose_channel_fold(C, HW):
    """When HW < 128, fold g consecutive channels into the lane axis so stores
    are (closer to) full 128-lane vectors. g divides C; folded row kept small."""
    if HW >= 128 or C <= 1:
        return 1
    best = 1
    for g in range(2, C + 1):
        if C % g:
            continue
        if g * HW > 1024:  # keep folded rows a handful of vregs wide
            break
        best = g
        if g * HW >= 128:
            break
    return best


def _choose_blocks(B, Cg, L, itemsize, smul, allow_hw_tiling):
    """Pick (bb, cb, hw_blk) so a single image block stays within a
    generation-aware budget (the double-buffered pipeline footprint is
    ~4.25x that block) while staying lane-dense and megacore friendly."""
    budget = max(1 << 20, min(8 << 20, _vmem_capacity_bytes() // 12))
    slab = Cg * L * itemsize

    if slab <= budget:
        # Whole (Cg, L) slab fits: optionally pack batch elements (tiny layers),
        # but keep >= 2 grid steps whenever B >= 2 (v7x has 2 TensorCores).
        bb = max(1, min(B, budget // max(1, slab)))
        if B >= 2:
            bb = min(bb, max(1, B // 2))
        cb, hw_blk = Cg, L
    elif allow_hw_tiling and Cg * 128 * itemsize <= budget:
        # Keep full channels, tile the lane (H*W) axis with a big 128-multiple.
        bb, cb = 1, Cg
        hw_blk = _round_down(budget // (Cg * itemsize), 128)
    else:
        # Huge channel count (or no hw tiling allowed): tile channels instead.
        bb = 1
        hw_blk = L if (not allow_hw_tiling or L < 128) else 128
        cb = min(Cg, max(smul, _round_down(budget // (hw_blk * itemsize), smul)))

    # Guarantee >= 2 grid steps when cheap so both v7x TensorCores get work.
    steps = pl.cdiv(B, bb) * pl.cdiv(Cg, cb) * pl.cdiv(L, hw_blk)
    if steps < 2:
        if allow_hw_tiling and hw_blk == L and L >= 256 and L % 256 == 0:
            hw_blk = L // 2
        elif cb == Cg and Cg >= 2 * smul:
            cb = _round_down(Cg // 2, smul)
        elif bb > 1:
            bb = max(1, bb // 2)
    return bb, cb, hw_blk


def noise_injection(weight, image, noise=None, *, key=None):
    """JAX/Pallas equivalent of NoiseInjection.forward(image, noise).

    weight: (1,) float32 parameter (PyTorch init: zeros(1)).
    image:  (B, C, H, W) NCHW.
    noise:  optional (B, 1, H, W); if None it is sampled ~ N(0, 1) from `key`.
    """
    B, C, H, W = image.shape
    if noise is None:
        # TODO(synk): torch's `image.new_empty(...).normal_()` RNG stream cannot be
        # reproduced bit-exactly in JAX; we sample the same N(0, 1) distribution with
        # jax.random.normal. The `trace_model` noise-buffer caching branch (a
        # tracing-only side effect) is skipped.
        if key is None:
            raise ValueError("`key` must be provided when `noise` is None")
        noise = jax.random.normal(key, (B, 1, H, W), jnp.float32).astype(image.dtype)

    HW = H * W
    itemsize = jnp.dtype(image.dtype).itemsize
    smul = _sublane_multiple(image.dtype)

    g = _choose_channel_fold(C, HW)          # > 1 only when HW < 128
    Cg, L = C // g, g * HW

    img3 = image.reshape(B, Cg, L)           # free: NCHW is contiguous
    noi3 = noise.reshape(B, 1, HW)
    w = jnp.asarray(weight, jnp.float32).reshape(1)

    bb, cb, hw_blk = _choose_blocks(B, Cg, L, itemsize, smul,
                                    allow_hw_tiling=(g == 1))
    noise_hw_blk = hw_blk if g == 1 else HW

    grid = (pl.cdiv(B, bb), pl.cdiv(L, hw_blk), pl.cdiv(Cg, cb))

    # Double-buffered pipeline footprint: 2x image-in + 2x output + 2x noise.
    img_block_bytes = bb * cb * hw_blk * itemsize
    noise_block_bytes = bb * noise_hw_blk * itemsize
    footprint = 2 * (2 * img_block_bytes + noise_block_bytes)
    vmem_limit = int(min(48 << 20, max(32 << 20, footprint + (8 << 20))))

    compute_dtype = jnp.bfloat16 if image.dtype == jnp.bfloat16 else jnp.float32
    kernel = functools.partial(_noise_injection_kernel,
                               lane_repeat=g, compute_dtype=compute_dtype)

    out = pl.pallas_call(
        kernel,
        out_shape=jax.ShapeDtypeStruct((B, Cg, L), image.dtype),
        grid=grid,
        in_specs=[
            pl.BlockSpec(memory_space=pltpu.MemorySpace.SMEM),                   # weight
            pl.BlockSpec((bb, cb, hw_blk), lambda b, hwi, ci: (b, ci, hwi)),     # image
            pl.BlockSpec((bb, 1, noise_hw_blk), lambda b, hwi, ci: (b, 0, hwi)), # noise
        ],
        out_specs=pl.BlockSpec((bb, cb, hw_blk), lambda b, hwi, ci: (b, ci, hwi)),
        compiler_params=pltpu.CompilerParams(
            dimension_semantics=("parallel", "parallel", "parallel"),
            vmem_limit_bytes=vmem_limit),
    )(w, img3, noi3)
    return out.reshape(B, C, H, W)


if __name__ == "__main__":
    key = jax.random.PRNGKey(0)
    k_img, k_noise, k_gen = jax.random.split(key, 3)

    B, C, H, W = 2, 4, 16, 16
    image = jax.random.normal(k_img, (B, C, H, W), jnp.float32)
    noise = jax.random.normal(k_noise, (B, 1, H, W), jnp.float32)

    # Path 1: explicit noise + non-zero weight -> exact check vs. pure-JAX reference.
    weight = jnp.asarray([0.5], jnp.float32)
    fwd = jax.jit(noise_injection)
    out = fwd(weight, image, noise)
    jax.block_until_ready(out)
    ref = image + weight[0] * noise          # broadcast over the channel axis
    assert out.shape == (B, C, H, W) and out.dtype == jnp.float32
    np.testing.assert_allclose(np.asarray(out), np.asarray(ref),
                               rtol=1e-6, atol=1e-6)

    # Path 2: module default call (noise=None, weight initialized to zeros(1))
    #         -> output must equal the input image exactly.
    weight0 = jnp.zeros((1,), jnp.float32)   # matches nn.Parameter(torch.zeros(1))
    fwd_default = jax.jit(lambda w, img, k: noise_injection(w, img, None, key=k))
    out2 = fwd_default(weight0, image, k_gen)
    jax.block_until_ready(out2)
    np.testing.assert_allclose(np.asarray(out2), np.asarray(image),
                               rtol=0.0, atol=0.0)
    assert bool(jnp.all(jnp.isfinite(out2)))

    print("KERNEL_OK")
</pallas_src>

<mosaic_0001>
module attributes {stable_mosaic.version = 11 : i64} {
  func.func @_noise_injection_kernel(%arg0: i32, %arg1: i32, %arg2: i32, %arg3: memref<1xf32, #tpu.memory_space<smem>>, %arg4: memref<1x4x256xf32, #tpu.memory_space<vmem>>, %arg5: memref<1x1x256xf32, #tpu.memory_space<vmem>>, %arg6: memref<1x4x256xf32, #tpu.memory_space<vmem>>) attributes {dimension_semantics = [#tpu.dimension_semantics<parallel>, #tpu.dimension_semantics<parallel>, #tpu.dimension_semantics<parallel>], iteration_bounds = array<i64: 2, 1, 1>, scalar_prefetch = 0 : i64, scratch_operands = 0 : i64, tpu.core_type = #tpu.core_type<tc>, window_params = [{transform_indices = @transform_0, window_bounds = array<i64: 1>}, {transform_indices = @transform_1, window_bounds = array<i64: 1, 4, 256>}, {transform_indices = @transform_2, window_bounds = array<i64: 1, 1, 256>}, {transform_indices = @transform_3, window_bounds = array<i64: 1, 4, 256>}]} {
    %c0 = arith.constant 0 : index
    %0 = memref.load %arg3[%c0] : memref<1xf32, #tpu.memory_space<smem>>
    %c0_0 = arith.constant 0 : index
    %c0_1 = arith.constant 0 : index
    %c0_2 = arith.constant 0 : index
    %1 = vector.load %arg5[%c0_0, %c0_1, %c0_2] : memref<1x1x256xf32, #tpu.memory_space<vmem>>, vector<1x1x256xf32>
    %c0_3 = arith.constant 0 : index
    %c0_4 = arith.constant 0 : index
    %c0_5 = arith.constant 0 : index
    %2 = vector.load %arg4[%c0_3, %c0_4, %c0_5] : memref<1x4x256xf32, #tpu.memory_space<vmem>>, vector<1x4x256xf32>
    %3 = vector.broadcast %0 : f32 to vector<1x1x256xf32>
    %4 = arith.mulf %3, %1 : vector<1x1x256xf32>
    %5 = vector.broadcast %4 : vector<1x1x256xf32> to vector<1x4x256xf32>
    %6 = arith.addf %2, %5 : vector<1x4x256xf32>
    %c0_6 = arith.constant 0 : index
    %c0_7 = arith.constant 0 : index
    %c0_8 = arith.constant 0 : index
    %7 = vector.load %arg6[%c0_6, %c0_7, %c0_8] : memref<1x4x256xf32, #tpu.memory_space<vmem>>, vector<1x4x256xf32>
    tpu.vector_store %arg6[%c0_6, %c0_7, %c0_8], %6 {strides = array<i32>} : memref<1x4x256xf32, #tpu.memory_space<vmem>>, vector<1x4x256xf32>,
    return
  }
  func.func @transform_0(%arg0: i32, %arg1: i32, %arg2: i32) -> i32 {
    %c0_i32 = arith.constant 0 : i32
    %c0_i32_0 = arith.constant 0 : i32
    return %c0_i32 : i32
  }
  func.func @transform_1(%arg0: i32, %arg1: i32, %arg2: i32) -> (i32, i32, i32) {
    %c0_i32 = arith.constant 0 : i32
    return %arg0, %arg2, %arg1 : i32, i32, i32
  }
  func.func @transform_2(%arg0: i32, %arg1: i32, %arg2: i32) -> (i32, i32, i32) {
    %c0_i32 = arith.constant 0 : i32
    %c0_i32_0 = arith.constant 0 : i32
    return %arg0, %c0_i32, %arg1 : i32, i32, i32
  }
  func.func @transform_3(%arg0: i32, %arg1: i32, %arg2: i32) -> (i32, i32, i32) {
    %c0_i32 = arith.constant 0 : i32
    return %arg0, %arg2, %arg1 : i32, i32, i32
  }
}

</mosaic_0001>

<bundles_post_ra>
// kernel: noise_injection.1
= control target key start
LH: loop header
LB: loop body
LE: loop exit
PB: predicated region body
PF: predicated region fallthrough
CT: control target
= control target key end

     0   :  { %s505_s14 = smov 0   ;;  %s507_s15 = smov 0   ;;  %s538_s0 = inlined_call_operand.<no memory space> [shape: f32[1], index: 0, kind: input, shape index: {}]   ;;  %s539_s1 = inlined_call_operand.vmem [shape: f32[2,4,256], index: 1, kind: input, shape index: {}]   ;;  %s540_s2 = inlined_call_operand.vmem [shape: f32[2,1,256], index: 2, kind: input, shape index: {}]   ;;  %s541_s3 = inlined_call_operand.vmem [shape: f32[2,4,256], index: 3, kind: output, shape index: {}]  }
   0x1   :  { %8 = sst [smem:[#allocation2]] %s538_s0  ;;  %s509_s16 = smov 0  }
   0x2 LB: > { %s33_s0 = sadd.s32 1, %s476_s15  ;;  %p424_p0 = scmp.ge.s32.totalorder %s480_s16, 1  ;;  %s480_s16 = sphi %s509_s16, %s14_s16   ;;  %s476_s15 = sphi %s507_s15, %s543_s15   ;;  %s472_s14 = sphi %s505_s14, %s542_s14  }
   0x3   : > { %p35_p1 = scmp.ge.s32.totalorder %s33_s0, 2  ;;  %p190_p2 = scmp.lt.s32.totalorder %s480_s16, 3 }
   0x5   : > { %s545_s0 = smov (%p35_p1, %s33_s0), 0  ;;  %p191_p3 = pnand %p424_p0, %p190_p2 }
   0x6   : > { %p239_p4 = scmp.lt.s32.totalorder (!%p191_p3), %s472_s14, 1  ;;  %s275_s17 = sld [smem:[#allocation2]] (!%p191_p3) }
   0x7   : > { %194 = sbr.rel (%p191_p3) target bundleno = 25 (0x19), region = 32 }
   0xc   : > { %v281_v0 = vlaneseq  ;;  %s547_s14 = smov (!%p239_p4, %s472_s14), 1  ;;  %v278_v5 = vstv %s275_s17 }
   0xd   : > { %s432_s18 = sshll.u32 %s547_s14, 3  ;;  %s427_s19 = sshll.u32 %s547_s14, 1 }
   0xe   : > { %v282_v1 = vshrl.u32 %v281_v0, 7  ;;  %s259_s22 = scalar_lea.vmem %s540_s2, %s427_s19  ;;  %s250_s25 = scalar_lea.vmem %s539_s1, %s432_s18 }
   0xf   : > { %v276_v4 = vld [vmem:[%s259_s22] sm:$0x3]  ;;  %s273_s28 = scalar_lea.vmem %s541_s3, %s432_s18 }
  0x10   : > { %v283_v2 = vsub.s32 0, %v282_v1  ;;  %v287_v3 = vsub.s32 1, %v282_v1  ;;  %v279_v6 = vmul.f32 %v278_v5, %v276_v4  ;;  %v277_v9 = vld [vmem:[%s250_s25] sm:$0xff] }
  0x12   : > { %v284_v7 = vrot.slane %v279_v6, %v283_v2  ;;  %v288_v8 = vrot.slane %v279_v6, %v287_v3 }
  0x14   : > { %v289_v10 = vcombine.low %v284_v7, %v288_v8 }
  0x16   : > { %v291_v11 = vadd.f32 %v289_v10, %v277_v9 }
  0x18   : > { %292 = vst [vmem:[%s273_s28] sm:$0xff] %v291_v11 }
  0x19 PF: > { %s14_s16 = sadd.s32 1, %s480_s16   ;;  %s542_s14 = smov %s476_s15 }
  0x1a   : > { %p11_p5 = scmp.ge.s32.totalorder %s14_s16, 4   ;;  %s543_s15 = smov %s545_s0 }
  0x1c   :  { %13 = sbr.rel (!%p11_p5) target bundleno = 2 (0x2), region = 65 }

</bundles_post_ra>
